<compile_context>
chip_gen: v7x
topology: tpu7x:2x2x1
jax: 0.10.0
libtpu: 0.0.40
codegen_flags: <defaults>
</compile_context>

<pallas_src>
import functools

import jax
import jax.numpy as jnp
from jax.experimental import pallas as pl
from jax.experimental.pallas import tpu as pltpu

HIDDEN = 128
LANE = 128           # TPU lane width: output last dim kept lane-dense
SUBLANE = 8          # TPU sublane tile: batch rounded up to a multiple of 8
NEG_PAD = -1e30      # bias padding -> padded logits get exactly 0 probability
MAX_BATCH_BLOCK = 2048


def _round_up(n, m):
    return ((n + m - 1) // m) * m


def _cdiv(a, b):
    return -(-a // b)


def policy_mlp_kernel(x_ref, u_ref, w1_ref, b1_ref, w2_ref, b2_ref,
                      probs_ref, act_ref):
    mm_dtype = w1_ref.dtype  # bf16 on the MXU path (f32 accumulate)

    # Linear 1 + bias + ReLU (bias/ReLU in f32).
    h = jnp.dot(x_ref[...].astype(mm_dtype), w1_ref[...],
                preferred_element_type=jnp.float32)
    h = jnp.maximum(h + b1_ref[...], 0.0)

    # Linear 2 over lane-dense (padded-to-128) output columns.
    logits = jnp.dot(h.astype(w2_ref.dtype), w2_ref[...],
                     preferred_element_type=jnp.float32)
    logits = logits + b2_ref[...]

    # Numerically stable softmax; padded columns carry -1e30 bias -> exp == 0,
    # so the real columns form an exact softmax over the true action set.
    m = jnp.max(logits, axis=-1, keepdims=True)
    e = jnp.exp(logits - m)
    denom = jnp.sum(e, axis=-1, keepdims=True)
    probs_ref[...] = (e / denom).astype(probs_ref.dtype)   # exact divide

    # Fused categorical sampling (inverse-CDF):
    #   c_j = sum_{k<=j} e_k  via one triangular MXU matmul (MXU has slack),
    #   action = #{ j : c_j < u * total }  with u ~ U[0,1) per row.
    # Padded columns contribute exactly 0 to the cumsum so they can never be
    # selected (strict '<' against the total keeps action <= num_actions-1).
    a_pad = e.shape[-1]
    row = jax.lax.broadcasted_iota(jnp.int32, (a_pad, a_pad), 0)
    col = jax.lax.broadcasted_iota(jnp.int32, (a_pad, a_pad), 1)
    tri = (row <= col).astype(jnp.float32)                 # inclusive prefix-sum matrix
    csum = jnp.dot(e, tri, preferred_element_type=jnp.float32)
    total = jnp.max(csum, axis=-1, keepdims=True)          # == last cumsum entry
    thresh = u_ref[...] * total
    act = jnp.sum((csum < thresh).astype(jnp.int32), axis=-1, keepdims=True)
    act_ref[...] = act


def prepare_params(w1, b1, w2, b2, matmul_dtype=jnp.bfloat16):
    """Pad output columns to a lane-dense multiple of 128, cast weights for the MXU."""
    hidden, a = w2.shape
    a_pad = _round_up(max(a, LANE), LANE)
    w2p = jnp.zeros((hidden, a_pad), jnp.float32).at[:, :a].set(w2)
    b2p = jnp.full((1, a_pad), NEG_PAD, jnp.float32).at[:, :a].set(b2)
    kernel_params = (w1.astype(matmul_dtype),
                     b1.astype(jnp.float32),
                     w2p.astype(matmul_dtype),
                     b2p.astype(jnp.float32))
    return kernel_params, a


def _choose_batch_tiling(B):
    """Sublane-pad the batch; large batches get an even (>=2) balanced grid."""
    B_pad = _round_up(B, SUBLANE)
    if B_pad <= SUBLANE:
        return B_pad, B_pad          # tiny RL inference batches: single step
    # Even number of balanced steps keeps both v7x TensorCores busy; tb is
    # capped at MAX_BATCH_BLOCK so the per-step VMEM footprint stays a few MiB
    # (fits the default scoped-VMEM limit on v5e/v6e/v7x, no bump needed).
    n_steps = max(2, 2 * _cdiv(B_pad, 2 * MAX_BATCH_BLOCK))
    tb = _round_up(_cdiv(B_pad, n_steps), SUBLANE)
    return _round_up(B_pad, tb), tb


def policy_forward_padded(x, u, kernel_params):
    """Fused MLP + softmax + categorical sample.

    Returns padded (B_pad, A_pad) probs and (B_pad, 1) int32 actions; consumers
    with large batches should index these lazily rather than re-slicing.
    """
    w1, b1, w2, b2 = kernel_params
    B, K = x.shape
    A_pad = w2.shape[1]

    B_pad, tb = _choose_batch_tiling(B)
    x_p = jnp.zeros((B_pad, K), x.dtype).at[:B].set(x)
    u_p = jnp.zeros((B_pad, 1), jnp.float32).at[:B].set(u)

    flops = 2 * B_pad * (K * HIDDEN + HIDDEN * A_pad + A_pad * A_pad)
    bytes_accessed = (x_p.size * 4 + u_p.size * 4
                      + w1.size * 2 + b1.size * 4 + w2.size * 2 + b2.size * 4
                      + B_pad * A_pad * 4 + B_pad * 4)

    probs_p, act_p = pl.pallas_call(
        policy_mlp_kernel,
        out_shape=(jax.ShapeDtypeStruct((B_pad, A_pad), jnp.float32),
                   jax.ShapeDtypeStruct((B_pad, 1), jnp.int32)),
        grid_spec=pltpu.PrefetchScalarGridSpec(
            num_scalar_prefetch=0,
            grid=(B_pad // tb,),
            in_specs=[
                pl.BlockSpec((tb, K), lambda i: (i, 0)),
                pl.BlockSpec((tb, 1), lambda i: (i, 0)),
                pl.BlockSpec((K, HIDDEN), lambda i: (0, 0)),      # VMEM-resident
                pl.BlockSpec((1, HIDDEN), lambda i: (0, 0)),      # VMEM-resident
                pl.BlockSpec((HIDDEN, A_pad), lambda i: (0, 0)),  # VMEM-resident
                pl.BlockSpec((1, A_pad), lambda i: (0, 0)),       # VMEM-resident
            ],
            out_specs=[
                pl.BlockSpec((tb, A_pad), lambda i: (i, 0)),      # lane-dense slab
                pl.BlockSpec((tb, 1), lambda i: (i, 0)),          # sampled action
            ],
        ),
        compiler_params=pltpu.CompilerParams(
            dimension_semantics=("parallel",)),
        cost_estimate=pl.CostEstimate(
            flops=flops,
            transcendentals=B_pad * A_pad,
            bytes_accessed=bytes_accessed),
    )(x_p, u_p, w1, b1, w2, b2)

    return probs_p, act_p


@functools.partial(jax.jit, static_argnames=("num_actions",))
def policy_network_forward(x, kernel_params, num_actions, sample_key):
    """Full Policy_Network.forward: returns (action, probs).

    probs are the Categorical distribution parameters; the sample is drawn
    inside the kernel (inverse-CDF over the softmax), so there is no separate
    jax.random.categorical dispatch and no log-prob writeback.
    """
    B = x.shape[0]
    # Tiny per-row uniform noise (B,1); everything per-action stays in-kernel.
    u = jax.random.uniform(sample_key, (B, 1), jnp.float32)
    probs_p, act_p = policy_forward_padded(x, u, kernel_params)
    # Narrow once here at the consumer boundary (inside the jit); large-batch
    # training loops should keep the padded slab and index it lazily instead.
    return act_p[:B, 0], probs_p[:B, :num_actions]


def init_params(key, input_size, output_size):
    """Deterministic init mimicking PyTorch nn.Linear default U(-1/sqrt(fan_in), +)."""
    k1, k2, k3, k4 = jax.random.split(key, 4)
    bound1 = 1.0 / jnp.sqrt(jnp.float32(input_size))
    bound2 = 1.0 / jnp.sqrt(jnp.float32(HIDDEN))
    w1 = jax.random.uniform(k1, (input_size, HIDDEN), jnp.float32, -bound1, bound1)
    b1 = jax.random.uniform(k2, (1, HIDDEN), jnp.float32, -bound1, bound1)
    w2 = jax.random.uniform(k3, (HIDDEN, output_size), jnp.float32, -bound2, bound2)
    b2 = jax.random.uniform(k4, (1, output_size), jnp.float32, -bound2, bound2)
    return w1, b1, w2, b2


if __name__ == "__main__":
    input_size = 16   # observation dim
    output_size = 8   # number of discrete actions
    batch = 2

    root = jax.random.PRNGKey(0)
    k_param, k_x, k_sample = jax.random.split(root, 3)

    w1, b1, w2, b2 = init_params(k_param, input_size, output_size)
    kernel_params, num_actions = prepare_params(w1, b1, w2, b2)
    x = jax.random.normal(k_x, (batch, input_size), jnp.float32)

    action, probs = policy_network_forward(x, kernel_params, num_actions, k_sample)
    jax.block_until_ready((action, probs))

    # Pure-JAX reference using the same bf16 MXU casts (f32 accum + f32 softmax).
    # (bf16 weights/activations on the matmul path diverge from the f32 PyTorch
    #  module at the ~1e-3 level -- fine for policy sampling.)
    mm = jnp.bfloat16
    h_ref = jnp.maximum(
        jnp.dot(x.astype(mm), w1.astype(mm), preferred_element_type=jnp.float32) + b1, 0.0)
    logits_ref = jnp.dot(h_ref.astype(mm), w2.astype(mm),
                         preferred_element_type=jnp.float32) + b2
    probs_ref = jax.nn.softmax(logits_ref, axis=-1)

    assert probs.shape == (batch, output_size)
    assert jnp.allclose(probs, probs_ref, atol=2e-3, rtol=0)
    assert jnp.allclose(jnp.sum(probs, axis=-1), 1.0, atol=2e-3)
    assert action.shape == (batch,)
    assert bool(jnp.all((action >= 0) & (action < output_size)))

    # Cross-check the fused sampler against the same inverse-CDF in plain JAX
    # (the same uniform draw is reproduced from the same key/shape/dtype).
    u_ref = jax.random.uniform(k_sample, (batch, 1), jnp.float32)
    cdf = jnp.cumsum(probs_ref, axis=-1)
    action_ref = jnp.sum((cdf < u_ref * cdf[:, -1:]).astype(jnp.int32), axis=-1)
    assert bool(jnp.all(action == action_ref))

    print("KERNEL_OK")
</pallas_src>

<mosaic_0001>
module attributes {stable_mosaic.version = 11 : i64} {
  func.func @policy_mlp_kernel(%arg0: i32, %arg1: memref<8x16xf32, #tpu.memory_space<vmem>>, %arg2: memref<8x1xf32, #tpu.memory_space<vmem>>, %arg3: memref<16x128xbf16, #tpu.memory_space<vmem>>, %arg4: memref<1x128xf32, #tpu.memory_space<vmem>>, %arg5: memref<128x128xbf16, #tpu.memory_space<vmem>>, %arg6: memref<1x128xf32, #tpu.memory_space<vmem>>, %arg7: memref<8x128xf32, #tpu.memory_space<vmem>>, %arg8: memref<8x1xi32, #tpu.memory_space<vmem>>) attributes {dimension_semantics = [#tpu.dimension_semantics<parallel>], iteration_bounds = array<i64: 1>, scalar_prefetch = 0 : i64, scratch_operands = 0 : i64, tpu.core_type = #tpu.core_type<tc>, window_params = [{transform_indices = @transform_0, window_bounds = array<i64: 8, 16>}, {transform_indices = @transform_1, window_bounds = array<i64: 8, 1>}, {pipeline_mode = #tpu.pipeline_mode<synchronous>, transform_indices = @transform_2, window_bounds = array<i64: 16, 128>}, {pipeline_mode = #tpu.pipeline_mode<synchronous>, transform_indices = @transform_3, window_bounds = array<i64: 1, 128>}, {pipeline_mode = #tpu.pipeline_mode<synchronous>, transform_indices = @transform_4, window_bounds = array<i64: 128, 128>}, {pipeline_mode = #tpu.pipeline_mode<synchronous>, transform_indices = @transform_5, window_bounds = array<i64: 1, 128>}, {transform_indices = @transform_6, window_bounds = array<i64: 8, 128>}, {transform_indices = @transform_7, window_bounds = array<i64: 8, 1>}]} {
    %c0 = arith.constant 0 : index
    %c0_0 = arith.constant 0 : index
    %0 = vector.load %arg1[%c0, %c0_0] : memref<8x16xf32, #tpu.memory_space<vmem>>, vector<8x16xf32>
    %1 = arith.truncf %0 : vector<8x16xf32> to vector<8x16xbf16>
    %c0_1 = arith.constant 0 : index
    %c0_2 = arith.constant 0 : index
    %2 = vector.load %arg3[%c0_1, %c0_2] : memref<16x128xbf16, #tpu.memory_space<vmem>>, vector<16x128xbf16>
    %cst = arith.constant dense<0.000000e+00> : vector<8x128xf32>
    %3 = tpu.matmul %1, %2, %cst {dimension_numbers = #tpu.dot_dimension_numbers<[1], [0], [0], [1], [0, 0, 1, 1], [], []>} : vector<8x16xbf16>, vector<16x128xbf16>, vector<8x128xf32> -> vector<8x128xf32>
    %c0_3 = arith.constant 0 : index
    %c0_4 = arith.constant 0 : index
    %4 = vector.load %arg4[%c0_3, %c0_4] : memref<1x128xf32, #tpu.memory_space<vmem>>, vector<1x128xf32>
    %5 = vector.broadcast %4 : vector<1x128xf32> to vector<8x128xf32>
    %6 = arith.addf %3, %5 : vector<8x128xf32>
    %cst_5 = arith.constant 0.000000e+00 : f32
    %7 = vector.broadcast %cst_5 : f32 to vector<8x128xf32>
    %8 = arith.maximumf %6, %7 : vector<8x128xf32>
    %9 = arith.truncf %8 : vector<8x128xf32> to vector<8x128xbf16>
    %c0_6 = arith.constant 0 : index
    %c0_7 = arith.constant 0 : index
    %10 = vector.load %arg5[%c0_6, %c0_7] : memref<128x128xbf16, #tpu.memory_space<vmem>>, vector<128x128xbf16>
    %cst_8 = arith.constant dense<0.000000e+00> : vector<8x128xf32>
    %11 = tpu.matmul %9, %10, %cst_8 {dimension_numbers = #tpu.dot_dimension_numbers<[1], [0], [0], [1], [0, 0, 1, 1], [], []>} : vector<8x128xbf16>, vector<128x128xbf16>, vector<8x128xf32> -> vector<8x128xf32>
    %c0_9 = arith.constant 0 : index
    %c0_10 = arith.constant 0 : index
    %12 = vector.load %arg6[%c0_9, %c0_10] : memref<1x128xf32, #tpu.memory_space<vmem>>, vector<1x128xf32>
    %13 = vector.broadcast %12 : vector<1x128xf32> to vector<8x128xf32>
    %14 = arith.addf %11, %13 : vector<8x128xf32>
    %cst_11 = arith.constant dense<0xFF800000> : vector<8xf32>
    %15 = vector.multi_reduction <maximumf>, %14, %cst_11 [1] : vector<8x128xf32> to vector<8xf32>
    %16 = vector.shape_cast %15 : vector<8xf32> to vector<8x1xf32>
    %17 = vector.broadcast %16 : vector<8x1xf32> to vector<8x128xf32>
    %18 = arith.subf %14, %17 : vector<8x128xf32>
    %19 = math.exp %18 : vector<8x128xf32>
    %cst_12 = arith.constant dense<0.000000e+00> : vector<8xf32>
    %20 = vector.multi_reduction <add>, %19, %cst_12 [1] : vector<8x128xf32> to vector<8xf32>
    %21 = vector.shape_cast %20 : vector<8xf32> to vector<8x1xf32>
    %22 = vector.broadcast %21 : vector<8x1xf32> to vector<8x128xf32>
    %23 = arith.divf %19, %22 : vector<8x128xf32>
    %c0_13 = arith.constant 0 : index
    %c0_14 = arith.constant 0 : index
    %24 = vector.load %arg7[%c0_13, %c0_14] : memref<8x128xf32, #tpu.memory_space<vmem>>, vector<8x128xf32>
    tpu.vector_store %arg7[%c0_13, %c0_14], %23 {strides = array<i32>} : memref<8x128xf32, #tpu.memory_space<vmem>>, vector<8x128xf32>,
    %25 = tpu.iota {dimensions = array<i32: 0>} : vector<128x128xi32>
    %26 = tpu.iota {dimensions = array<i32: 1>} : vector<128x128xi32>
    %27 = arith.cmpi sle, %25, %26 : vector<128x128xi32>
    %28 = arith.extui %27 : vector<128x128xi1> to vector<128x128xi32>
    %29 = arith.sitofp %28 : vector<128x128xi32> to vector<128x128xf32>
    %cst_15 = arith.constant dense<0.000000e+00> : vector<8x128xf32>
    %30 = tpu.matmul %19, %29, %cst_15 {dimension_numbers = #tpu.dot_dimension_numbers<[1], [0], [0], [1], [0, 0, 1, 1], [], []>} : vector<8x128xf32>, vector<128x128xf32>, vector<8x128xf32> -> vector<8x128xf32>
    %cst_16 = arith.constant dense<0xFF800000> : vector<8xf32>
    %31 = vector.multi_reduction <maximumf>, %30, %cst_16 [1] : vector<8x128xf32> to vector<8xf32>
    %32 = vector.shape_cast %31 : vector<8xf32> to vector<8x1xf32>
    %c0_17 = arith.constant 0 : index
    %c0_18 = arith.constant 0 : index
    %33 = vector.load %arg2[%c0_17, %c0_18] : memref<8x1xf32, #tpu.memory_space<vmem>>, vector<8x1xf32>
    %34 = arith.mulf %33, %32 : vector<8x1xf32>
    %35 = vector.broadcast %34 : vector<8x1xf32> to vector<8x128xf32>
    %36 = arith.cmpf olt, %30, %35 : vector<8x128xf32>
    %37 = arith.extui %36 : vector<8x128xi1> to vector<8x128xi32>
    %cst_19 = arith.constant dense<0> : vector<8xi32>
    %38 = vector.multi_reduction <add>, %37, %cst_19 [1] : vector<8x128xi32> to vector<8xi32>
    %39 = vector.shape_cast %38 : vector<8xi32> to vector<8x1xi32>
    %c0_20 = arith.constant 0 : index
    %c0_21 = arith.constant 0 : index
    %40 = vector.load %arg8[%c0_20, %c0_21] : memref<8x1xi32, #tpu.memory_space<vmem>>, vector<8x1xi32>
    tpu.vector_store %arg8[%c0_20, %c0_21], %39 {strides = array<i32>} : memref<8x1xi32, #tpu.memory_space<vmem>>, vector<8x1xi32>,
    return
  }
  func.func @transform_0(%arg0: i32) -> (i32, i32) {
    %c0_i32 = arith.constant 0 : i32
    %c0_i32_0 = arith.constant 0 : i32
    return %arg0, %c0_i32 : i32, i32
  }
  func.func @transform_1(%arg0: i32) -> (i32, i32) {
    %c0_i32 = arith.constant 0 : i32
    %c0_i32_0 = arith.constant 0 : i32
    return %arg0, %c0_i32 : i32, i32
  }
  func.func @transform_2(%arg0: i32) -> (i32, i32) {
    %c0_i32 = arith.constant 0 : i32
    %c0_i32_0 = arith.constant 0 : i32
    %c0_i32_1 = arith.constant 0 : i32
    return %c0_i32, %c0_i32_0 : i32, i32
  }
  func.func @transform_3(%arg0: i32) -> (i32, i32) {
    %c0_i32 = arith.constant 0 : i32
    %c0_i32_0 = arith.constant 0 : i32
    %c0_i32_1 = arith.constant 0 : i32
    return %c0_i32, %c0_i32_0 : i32, i32
  }
  func.func @transform_4(%arg0: i32) -> (i32, i32) {
    %c0_i32 = arith.constant 0 : i32
    %c0_i32_0 = arith.constant 0 : i32
    %c0_i32_1 = arith.constant 0 : i32
    return %c0_i32, %c0_i32_0 : i32, i32
  }
  func.func @transform_5(%arg0: i32) -> (i32, i32) {
    %c0_i32 = arith.constant 0 : i32
    %c0_i32_0 = arith.constant 0 : i32
    %c0_i32_1 = arith.constant 0 : i32
    return %c0_i32, %c0_i32_0 : i32, i32
  }
  func.func @transform_6(%arg0: i32) -> (i32, i32) {
    %c0_i32 = arith.constant 0 : i32
    %c0_i32_0 = arith.constant 0 : i32
    return %arg0, %c0_i32 : i32, i32
  }
  func.func @transform_7(%arg0: i32) -> (i32, i32) {
    %c0_i32 = arith.constant 0 : i32
    %c0_i32_0 = arith.constant 0 : i32
    return %arg0, %c0_i32 : i32, i32
  }
}

</mosaic_0001>

<bundles_post_ra>
// kernel: policy_network_forward.1
= control target key start
LH: loop header
LB: loop body
LE: loop exit
PB: predicated region body
PF: predicated region fallthrough
CT: control target
= control target key end

     0   :  { %13 = vsyncpa [#allocation3], 0  ;;  %s599_s24 = smov [#allocation2]   ;;  %s709_s0 = inlined_call_operand.vmem [shape: f32[8,16], index: 0, kind: input, shape index: {}]   ;;  %s710_s1 = inlined_call_operand.vmem [shape: f32[8,1], index: 1, kind: input, shape index: {}]   ;;  %s711_s2 = inlined_call_operand.hbm [shape: bf16[16,128], index: 2, kind: input, shape index: {}]   ;;  %s712_s3 = inlined_call_operand.vmem [shape: f32[1,128], index: 3, kind: input, shape index: {}]   ;;  %s713_s4 = inlined_call_operand.vmem [shape: bf16[128,128], index: 4, kind: input, shape index: {}]   ;;  %s714_s5 = inlined_call_operand.vmem [shape: f32[1,128], index: 5, kind: input, shape index: {}]   ;;  %s715_s6 = inlined_call_operand.vmem [shape: f32[8,128], index: 6, kind: output, shape index: {0}]   ;;  %s716_s7 = inlined_call_operand.vmem [shape: s32[8,1], index: 7, kind: output, shape index: {1}]  }
   0x1   :  { %s23_s25 = sshll.u32 %s599_s24, 4  ;;  %s575_s28 = scalar_lea.hbm %s711_s2, 128  ;;  %s24_s25 = int_to_ptr.vmem [resolvable:$true] %s23_s25 }
   0x2   :  { %p576_p0 = scmp.ne.s32.totalorder %s711_s2, %s575_s28  ;;  %p579_p1 = scmp.lt.u32.totalorder %s575_s28, %s711_s2 }
   0x4   :  { %p581_p2 = pnand %p579_p1, %p576_p0 }
   0x6   :  { %584 = shalt.err (!%p581_p2)
}
   0x7   :  { %s585_s10 = scalar_lea.vmem %s24_s25, 128  ;;  %p590_p4 = scmp.lt.s32.totalorder %s24_s25, %s24_s25 }
   0x8   :  { %p586_p3 = scmp.ne.s32.totalorder %s24_s25, %s585_s10  ;;  %p591_p5 = scmp.lt.s32.totalorder %s585_s10, %s585_s10 }
   0xa   :  { %p592_p6 = por %p591_p5, %p590_p4 }
   0xc   :  { %p593_p7 = pnand %p592_p6, %p586_p3 }
   0xe   :  { %596 = shalt.err (!%p593_p7)
}
   0xf   :  { %s600_s11 = smov 64   ;;  %s601_s12 = smov 4  }
  0x10   :  { %29 = dma.hbm_to_vmem [thread:$0]  %s711_s2, 128, %s24_s25, [#allocation3], %s600_s11, %s600_s11, %s601_s12  }
  0x11   :  { %597 = dma.done.wait [#allocation3], 128  }
  0x12   :  { %598 = vsyncadd [#allocation3], 4294967168  ;;  %v602_v0 = vmov 0.0   ;;  %vm603_vm0 = vmmov 0   ;;  %v562_v1 = vld [vmem:[#allocation2] sm:$0xff]   ;;  %vm57_vm1 = vcmask 130048   ;;  %v224_v20 = vlaneseq }
  0x13   :  { %467 = vmatprep.subr.bf16.mxu0 %v602_v0  ;;  %469 = vmatprep.mubr.msk.bf16.mxu0 %vm603_vm0, %v602_v0  ;;  %v40_v2 = vld [vmem:[%s709_s0] sm:$0xff]  ;;  %v564_v5 = vld [vmem:[%s713_s4 + $0x8] sm:$0xff]   ;;  %v565_v6 = vld [vmem:[%s713_s4 + $0x10] sm:$0xff]   ;;  %v604_v21 = vmov 0.0|0.0   ;;  %v605_v29 = vmov 1.0|1.0  }
  0x14   :  { %473 = vmatprep.subr.bf16.mxu1 %v602_v0  ;;  %489 = vmatprep.mubr.msk.bf16.mxu1 %vm603_vm0, %v602_v0  ;;  %v41_v3 = vpack.c.bf16 %v40_v2, %v40_v2  ;;  %v563_v4 = vld [vmem:[%s713_s4] sm:$0xff]   ;;  %v566_v7 = vld [vmem:[%s713_s4 + $0x18] sm:$0xff]   ;;  %v568_v9 = vld [vmem:[%s713_s4 + $0x28] sm:$0xff]   ;;  %v225_v22 = vshrl.u32 %v224_v20, 7  ;;  %v242_v23 = vand.u32 127, %v224_v20  ;;  %v606_v52 = vmov 0  }
  0x15   :  { %468 = vmatpush3.bf16.msra.mxu0 %v562_v1  ;;  %474 = vmatpush3.bf16.msra.mxu1 %v563_v4  ;;  %v567_v8 = vld [vmem:[%s713_s4 + $0x20] sm:$0xff]   ;;  %v569_v10 = vld [vmem:[%s713_s4 + $0x30] sm:$0xff]   ;;  %v570_v11 = vld [vmem:[%s713_s4 + $0x38] sm:$0xff]  }
  0x16   :  { %475 = vmatprep.subr.bf16.mxu1 %v602_v0  ;;  %v395_v12 = vld [vmem:[%s712_s3] ss:$0 sm:$0xff]  ;;  %528 = vmatprep.subr.bf16.mxu0 %v604_v21  ;;  %v226_v24 = vadd.s32 8, %v225_v22  ;;  %vm243_vm2 = vcmp.le.s32.totalorder %v225_v22, %v242_v23  ;;  %v227_v25 = vadd.s32 16, %v225_v22  ;;  %v228_v26 = vadd.s32 24, %v225_v22 }
  0x17   :  { %v229_v27 = vadd.s32 32, %v225_v22  ;;  %v230_v28 = vadd.s32 40, %v225_v22  ;;  %v231_v30 = vadd.s32 48, %v225_v22  ;;  %v232_v31 = vadd.s32 56, %v225_v22  ;;  %v398_v32 = vld [vmem:[%s714_s5] ss:$0 sm:$0xff]  ;;  %560 = vset.pattern.permute.xlu1 %v606_v52  ;;  %561 = vset.pattern.permute.xlu0 %v606_v52 }
  0x18   :  { %470 = vmatmul.mubr.msk.bf16.vlgmr.msra.gmra.mrb[0].mxu0 %vm57_vm1, %v41_v3  ;;  %vm244_vm3 = vcmp.le.s32.totalorder %v226_v24, %v242_v23  ;;  %vm245_vm4 = vcmp.le.s32.totalorder %v227_v25, %v242_v23  ;;  %vm246_vm5 = vcmp.le.s32.totalorder %v228_v26, %v242_v23  ;;  %v233_v38 = vadd.s32 64, %v225_v22  ;;  %v363_v53 = vld [vmem:[%s710_s1] sm:$0xff] }
  0x19   :  { %525 = vmatprep.mubr.msk.f32.mxu0 %vm603_vm0, %v602_v0  ;;  %476 = vmatpush3.bf16.msra.mxu1 %v564_v5  ;;  %vm529_vm6 = vmpackc.low %vm244_vm3, %vm243_vm2  ;;  %vm247_vm8 = vcmp.le.s32.totalorder %v229_v27, %v242_v23  ;;  %vm248_vm9 = vcmp.le.s32.totalorder %v230_v28, %v242_v23  ;;  %vm249_vm11 = vcmp.le.s32.totalorder %v231_v30, %v242_v23  ;;  %v234_v39 = vadd.s32 72, %v225_v22 }
  0x1a   :  { %477 = vmatprep.subr.bf16.mxu1 %v602_v0  ;;  %530 = vmatpush3.bf16.msk.msra.mxu0 %vm529_vm6, %v605_v29  ;;  %vm532_vm7 = vmpackc.low %vm246_vm5, %vm245_vm4  ;;  %vm250_vm12 = vcmp.le.s32.totalorder %v232_v31, %v242_v23  ;;  %vm251_vm14 = vcmp.le.s32.totalorder %v233_v38, %v242_v23  ;;  %v235_v40 = vadd.s32 80, %v225_v22  ;;  %v236_v41 = vadd.s32 88, %v225_v22 }
  0x1b   :  { %531 = vmatprep.subr.bf16.mxu0 %v604_v21  ;;  %vm535_vm10 = vmpackc.low %vm248_vm9, %vm247_vm8  ;;  %vm252_vm15 = vcmp.le.s32.totalorder %v234_v39, %v242_v23  ;;  %v237_v42 = vadd.s32 96, %v225_v22  ;;  %v238_v43 = vadd.s32 104, %v225_v22  ;;  %v239_v44 = vadd.s32 112, %v225_v22 }
  0x1c   :  { %vm538_vm13 = vmpackc.low %vm250_vm12, %vm249_vm11  ;;  %vm253_vm1 = vcmp.le.s32.totalorder %v235_v40, %v242_v23  ;;  %vm254_vm2 = vcmp.le.s32.totalorder %v236_v41, %v242_v23  ;;  %v240_v45 = vadd.s32 120, %v225_v22  ;;  %vm384_vm11 = vcmask 7168  }
  0x1d   :  { %478 = vmatpush3.bf16.msra.mxu1 %v565_v6  ;;  %vm541_vm0 = vmpackc.low %vm252_vm15, %vm251_vm14  ;;  %vm255_vm4 = vcmp.le.s32.totalorder %v237_v42, %v242_v23  ;;  %vm256_vm5 = vcmp.le.s32.totalorder %v238_v43, %v242_v23  ;;  %vm257_vm6 = vcmp.le.s32.totalorder %v239_v44, %v242_v23 }
  0x1e   :  { %479 = vmatprep.subr.bf16.mxu1 %v602_v0  ;;  %533 = vmatpush3.bf16.msk.msra.mxu0 %vm532_vm7, %v605_v29  ;;  %vm544_vm3 = vmpackc.low %vm254_vm2, %vm253_vm1  ;;  %vm258_vm7 = vcmp.le.s32.totalorder %v240_v45, %v242_v23 }
  0x1f   :  { %534 = vmatprep.subr.bf16.mxu0 %v604_v21  ;;  %vm547_vm8 = vmpackc.low %vm256_vm5, %vm255_vm4 }
  0x20   :  { %vm550_vm9 = vmpackc.low %vm258_vm7, %vm257_vm6 }
  0x21   :  { %480 = vmatpush3.bf16.msra.mxu1 %v566_v7 }
  0x22   :  { %481 = vmatprep.subr.bf16.mxu1 %v602_v0  ;;  %536 = vmatpush3.bf16.msk.msra.mxu0 %vm535_vm10, %v605_v29 }
  0x23   :  { %537 = vmatprep.subr.bf16.mxu0 %v604_v21 }
  0x25   :  { %482 = vmatpush3.bf16.msra.mxu1 %v567_v8 }
  0x26   :  { %483 = vmatprep.subr.bf16.mxu1 %v602_v0  ;;  %539 = vmatpush3.bf16.msk.msra.mxu0 %vm538_vm13, %v605_v29 }
  0x27   :  { %540 = vmatprep.subr.bf16.mxu0 %v604_v21 }
  0x29   :  { %484 = vmatpush3.bf16.msra.mxu1 %v568_v9 }
  0x2a   :  { %485 = vmatprep.subr.bf16.mxu1 %v602_v0  ;;  %542 = vmatpush3.bf16.msk.msra.mxu0 %vm541_vm0, %v605_v29 }
  0x2b   :  { %543 = vmatprep.subr.bf16.mxu0 %v604_v21 }
  0x2d   :  { %486 = vmatpush3.bf16.msra.mxu1 %v569_v10 }
  0x2e   :  { %487 = vmatprep.subr.bf16.mxu1 %v602_v0  ;;  %545 = vmatpush3.bf16.msk.msra.mxu0 %vm544_vm3, %v605_v29 }
  0x2f   :  { %546 = vmatprep.subr.bf16.mxu0 %v604_v21 }
  0x31   :  { %488 = vmatpush3.bf16.msra.mxu1 %v570_v11 }
  0x32   :  { %548 = vmatpush3.bf16.msk.msra.mxu0 %vm547_vm8, %v605_v29 }
  0x33   :  { %549 = vmatprep.subr.bf16.mxu0 %v604_v21 }
  0x36   :  { %551 = vmatpush3.bf16.msk.msra.mxu0 %vm550_vm9, %v605_v29 }
  0xeb   :  { %v95_v13 = vpop.f32.mrb[0].mxu0 }
  0xec   :  { %v96_v14 = vadd.f32 %v395_v12, %v95_v13  ;;  %v471_v15 = vpop.f32.mrb[1].mxu0 }
  0xed   :  { %v98_v16 = vpop.f32.mrb[2].mxu0 }
  0xee   :  { %v101_v17 = vmax.f32 %v96_v14, 0.0  ;;  %v472_v18 = vpop.f32.mrb[3].mxu0 }
  0xf0   :  { %v102_v19 = vpack.c.bf16 %v101_v17, %v101_v17 }
  0xf2   :  { %490 = vmatmul.mubr.bf16.vlgmr.msra.gmra.mrb[0].mxu1 %v102_v19 }
 0x1c5   :  { %v208_v33 = vpop.f32.mrb[0].mxu1 }
 0x1c6   :  { %v209_v34 = vadd.f32 %v398_v32, %v208_v33  ;;  %v491_v35 = vpop.f32.mrb[1].mxu1 }
 0x1c7   :  { %v211_v36 = vpop.f32.mrb[2].mxu1 }
 0x1c8   :  { %214 = vmax.xlane.f32.xlu0 %v209_v34  ;;  %v492_v37 = vpop.f32.mrb[3].mxu1 }
 0x255   :  { %v215_v46 = vpop.xlane.xlu0 %214 }
 0x256   :  { %v216_v47 = vsub.f32 %v209_v34, %v215_v46 }
 0x258   :  { %v217_v48 = vmul.f32 1.442695, %v216_v47 }
 0x25a   :  { %571 = vpow2.f32 %v217_v48 }
 0x264   :  { %v572_v49 = vpop.eup %571 }
 0x265   :  { %526 = vmatmul.mubr.f32.vlgmr.msra.gmra.mrb[4].mxu0 %v572_v49 }
 0x338   :  { %v357_v50 = vpop.f32.mrb[4].mxu0 }
 0x339   :  { %361 = vmax.xlane.f32.xlu0 %v357_v50  ;;  %v527_v51 = vpop.f32.mrb[5].mxu0 }
 0x3c6   :  { %v362_v54 = vpop.xlane.xlu0 %361 }
 0x3c7   :  { %v364_v55 = vmul.f32 %v363_v53, %v362_v54 }
 0x3c9   :  { %367 = vperm.xlu1 %560, %v364_v55  }
 0x3ed   :  { %219 = vadd.xlane.f32.xlu1 %v572_v49 }
 0x448   :  { %v368_v56 = vpop.permute.xlu1 %367 }
 0x449   :  { %vm370_vm10 = vcmp.lt.f32.partialorder %v357_v50, %v368_v56 }
 0x44a   :  { %v371_v57 = vsel %vm370_vm10, 1, %v606_v52 }
 0x44b   :  { %v373_v58 = vshrl.u32 %v371_v57, 16  ;;  %v372_v60 = vand.u32 65535, %v371_v57 }
 0x44d   :  { %v375_v59 = vcvt.s32.f32 %v373_v58  ;;  %v374_v61 = vcvt.s32.f32 %v372_v60 }
 0x44f   :  { %378 = vadd.xlane.f32.xlu0 %v375_v59 }
 0x453   :  { %376 = vadd.xlane.f32.xlu0 %v374_v61 }
 0x47a   :  { %v220_v62 = vpop.xlane.xlu1 %219 }
 0x47b   :  { %573 = vrcp.f32 %v220_v62 }
 0x485   :  { %v574_v63 = vpop.eup %573 }
 0x486   :  { %v222_v0 = vmul.f32 %v574_v63, %v572_v49 }
 0x488   :  { %223 = vst [vmem:[%s715_s6] sm:$0xff] %v222_v0 }
 0x4dc   :  { %v379_v1 = vpop.xlane.xlu0 %378 }
 0x4dd   :  { %v381_v2 = vcvt.f32.s32 %v379_v1 }
 0x4df   :  { %v382_v4 = vshll.u32 %v381_v2, 16 }
 0x4e0   :  { %v377_v3 = vpop.xlane.xlu0 %376 }
 0x4e1   :  { %v380_v5 = vcvt.f32.s32 %v377_v3 }
 0x4e3   :  { %v383_v6 = vadd.s32 %v382_v4, %v380_v5 }
 0x4e5   :  { %385 = vst.msk [vmem:[%s716_s7] sm:$0xff] %vm384_vm11, %v383_v6 }
 0x4e6   :  { %394 = vsyncpa [#allocation3], 1 }

</bundles_post_ra>
